<compile_context>
chip_gen: v7x
topology: tpu7x:2x2x1
jax: 0.10.0
libtpu: 0.0.40
codegen_flags: <defaults>
</compile_context>

<pallas_src>
import functools

import jax
import jax.numpy as jnp
from jax.experimental import pallas as pl
from jax.experimental.pallas import tpu as pltpu


def attention_kernel(x_ref, w_ref, o_ref, *, height, width):
    # x_ref / o_ref: (bb, C, H*W) in VMEM (lane-dense: spatial on the lane axis)
    # w_ref:         (3C, C)      in VMEM (stacked convF / convG / convH weights)
    bb, C, S = x_ref.shape
    w = w_ref[...]                                                 # (3C, C)

    # bb is 1 (default) or 2 (clamped in the wrapper), so this unrolled loop
    # stays tiny and every contraction is a plain 2-D / batched 3-D dot.
    for b in range(bb):
        xb = x_ref[b]                                              # (C, S)

        # Fused 1x1 convs: one (3C, C) @ (C, S) MXU matmul gives f, g, h.
        fgh = jnp.dot(w, xb, preferred_element_type=jnp.float32)   # (3C, S)

        # Single lane relayout to spatial planes; leading-axis slices are free
        # (they cut between whole (H, W) vreg planes, no (8,128) crossing).
        fgh3 = fgh.reshape(3 * C, height, width)                   # (3C, H, W)
        f3 = fgh3[0 * C:1 * C]                                     # (C, H, W)
        g3 = fgh3[1 * C:2 * C]                                     # (C, H, W)
        h3 = fgh3[2 * C:3 * C]                                     # (C, H, W)

        # Per-channel spatial matmul, batched over C (requires H == W).
        s3 = jnp.einsum("cik,ckj->cij", f3, g3,
                        preferred_element_type=jnp.float32)        # (C, H, W)

        # Softmax over the channel axis, directly in the (C, H, W) layout:
        # leading-axis max/sum is a pure-VPU reduce (no cross-lane XLU work,
        # no reshape round-trip).  The denominator is indexed by the contracted
        # spatial position, so it must be applied before the second matmul.
        m = jnp.max(s3, axis=0, keepdims=True)                     # (1, H, W)
        e = jnp.exp(s3 - m)                                        # (C, H, W)
        den = jnp.sum(e, axis=0, keepdims=True)                    # (1, H, W)
        inv = pl.reciprocal(den, approx=True)
        inv = inv * (2.0 - den * inv)   # one Newton step -> ~f32-exact 1/den
        p3 = e * inv                                               # (C, H, W)

        # attn[c] = h[c] @ attn_map[c]
        a3 = jnp.einsum("cik,ckj->cij", h3, p3,
                        preferred_element_type=jnp.float32)        # (C, H, W)

        # One relayout back to lane-dense, residual add, full-width store.
        o_ref[b] = (xb + a3.reshape(C, S)).astype(o_ref.dtype)


def _round_up(n, m):
    return (n + m - 1) // m * m


def attention_forward(x, wf, wg, wh, *, batch_block=1):
    """x: (B, C, H, W) float32; w*: (C, C) float32 (squeezed 1x1-conv weights)."""
    B, C, H, W = x.shape
    assert H == W, "torch.matmul on (H, W) planes requires square spatial dims"
    S = H * W
    itemsize = jnp.dtype(x.dtype).itemsize

    # Lane-dense presentation: spatial dims folded onto the 128-lane axis.
    x_flat = x.reshape(B, C, S)
    # Stack the three 1x1-conv weights so the kernel does one channel-mix matmul.
    w = jnp.concatenate([wf, wg, wh], axis=0)            # (3C, C)

    # batch_block policy: default 1 -> grid=(B,), so BlockSpec double-buffers
    # batch b+1's DMA behind batch b's compute.  Any override is clamped by the
    # VMEM budget (v7x has only 64 MiB physical / ~32 MiB default scoped VMEM)
    # and by 2 (the in-kernel loop is unrolled; keep vreg live ranges short).
    vmem_budget = 24 << 20                               # headroom under 32 MiB
    per_batch_blk = C * S * itemsize
    bb_max = max(1, vmem_budget // (4 * per_batch_blk))  # 2x buffers x (in + out)
    batch_block = int(max(1, min(batch_block, bb_max, 2)))
    if B % batch_block != 0:
        batch_block = 1
    grid = (B // batch_block,)

    # Explicit VMEM limit: in+out blocks double-buffered + padded weight tile
    # + compute headroom, floored at 8 MiB, capped at the 32 MiB scoped default
    # (fits v7x's 64 MiB physical VMEM).
    blk_bytes = batch_block * per_batch_blk
    w_bytes = _round_up(3 * C, 8) * _round_up(C, 128) * itemsize
    need = 4 * blk_bytes + 2 * w_bytes + 16 * blk_bytes
    vmem_limit = int(min(max(need, 8 << 20), 32 << 20))

    kernel = functools.partial(attention_kernel, height=H, width=W)

    # TODO(synk): when B == 1 (single grid step) a second "parallel" grid axis
    # over spatial columns would keep both v7x TensorCores busy; omitted here
    # since the module is exercised with B >= 2 and v5e/v6e have a single TC.
    out_flat = pl.pallas_call(
        kernel,
        out_shape=jax.ShapeDtypeStruct((B, C, S), x.dtype),
        grid=grid,
        in_specs=[
            pl.BlockSpec((batch_block, C, S), lambda b: (b, 0, 0)),
            # Constant index_map -> the stacked weight stays VMEM-resident
            # across grid steps (no per-step re-DMA).
            pl.BlockSpec((3 * C, C), lambda b: (0, 0)),
        ],
        out_specs=pl.BlockSpec((batch_block, C, S), lambda b: (b, 0, 0)),
        compiler_params=pltpu.CompilerParams(
            dimension_semantics=("parallel",),
            vmem_limit_bytes=vmem_limit),
    )(x_flat, w)

    return out_flat.reshape(B, C, H, W)


def attention_reference(x, wf, wg, wh):
    """Pure-JAX reference matching the PyTorch forward semantics."""
    f = jnp.einsum("oc,bchw->bohw", wf, x)
    g = jnp.einsum("oc,bchw->bohw", wg, x)
    h = jnp.einsum("oc,bchw->bohw", wh, x)
    s = jnp.einsum("bcik,bckj->bcij", f, g)
    attn_map = jax.nn.softmax(s, axis=1)  # softmax over the channel dim
    attn = jnp.einsum("bcik,bckj->bcij", h, attn_map)
    return x + attn


def spectral_normalize(w):
    # Idealized spectral_norm: divide by the exact largest singular value
    # (PyTorch estimates sigma with a running power iteration; here the weight
    # is a deterministic synthetic parameter so we use the exact sigma).
    sigma = jnp.linalg.norm(w, ord=2)
    return w / sigma


if __name__ == "__main__":
    B, C, H, W = 2, 4, 16, 16

    key = jax.random.PRNGKey(0)
    kx, kf, kg, kh = jax.random.split(key, 4)

    x = jax.random.normal(kx, (B, C, H, W), dtype=jnp.float32)
    # nn.Conv2d(C, C, kernel_size=1, bias=False) weight is (C, C, 1, 1) -> (C, C)
    wf = spectral_normalize(0.5 * jax.random.normal(kf, (C, C), dtype=jnp.float32))
    wg = spectral_normalize(0.5 * jax.random.normal(kg, (C, C), dtype=jnp.float32))
    wh = spectral_normalize(0.5 * jax.random.normal(kh, (C, C), dtype=jnp.float32))

    out = attention_forward(x, wf, wg, wh)
    out = jax.block_until_ready(out)

    ref = attention_reference(x, wf, wg, wh)
    max_err = float(jnp.max(jnp.abs(out - ref)))
    assert out.shape == (B, C, H, W)
    assert jnp.allclose(out, ref, atol=1e-4, rtol=1e-4), f"max_err={max_err}"

    print("KERNEL_OK")
</pallas_src>

<mosaic_0001>
module attributes {stable_mosaic.version = 11 : i64} {
  func.func @attention_kernel(%arg0: i32, %arg1: memref<1x4x256xf32, #tpu.memory_space<vmem>>, %arg2: memref<12x4xf32, #tpu.memory_space<vmem>>, %arg3: memref<1x4x256xf32, #tpu.memory_space<vmem>>) attributes {dimension_semantics = [#tpu.dimension_semantics<parallel>], iteration_bounds = array<i64: 2>, scalar_prefetch = 0 : i64, scratch_operands = 0 : i64, tpu.core_type = #tpu.core_type<tc>, window_params = [{transform_indices = @transform_0, window_bounds = array<i64: 1, 4, 256>}, {pipeline_mode = #tpu.pipeline_mode<synchronous>, transform_indices = @transform_1, window_bounds = array<i64: 12, 4>}, {transform_indices = @transform_2, window_bounds = array<i64: 1, 4, 256>}]} {
    %c0 = arith.constant 0 : index
    %c0_0 = arith.constant 0 : index
    %0 = vector.load %arg2[%c0, %c0_0] : memref<12x4xf32, #tpu.memory_space<vmem>>, vector<12x4xf32>
    %c0_1 = arith.constant 0 : index
    %c0_2 = arith.constant 0 : index
    %c0_3 = arith.constant 0 : index
    %1 = vector.load %arg1[%c0_1, %c0_2, %c0_3] : memref<1x4x256xf32, #tpu.memory_space<vmem>>, vector<1x4x256xf32>
    %2 = vector.shape_cast %1 : vector<1x4x256xf32> to vector<4x256xf32>
    %cst = arith.constant dense<0.000000e+00> : vector<12x256xf32>
    %3 = tpu.matmul %0, %2, %cst {dimension_numbers = #tpu.dot_dimension_numbers<[1], [0], [0], [1], [0, 0, 1, 1], [], []>} : vector<12x4xf32>, vector<4x256xf32>, vector<12x256xf32> -> vector<12x256xf32>
    %4 = vector.shape_cast %3 : vector<12x256xf32> to vector<12x16x16xf32>
    %5 = vector.extract_strided_slice %4 {offsets = [0, 0, 0], sizes = [4, 16, 16], strides = [1, 1, 1]} : vector<12x16x16xf32> to vector<4x16x16xf32>
    %6 = vector.extract_strided_slice %4 {offsets = [4, 0, 0], sizes = [4, 16, 16], strides = [1, 1, 1]} : vector<12x16x16xf32> to vector<4x16x16xf32>
    %7 = vector.extract_strided_slice %4 {offsets = [8, 0, 0], sizes = [4, 16, 16], strides = [1, 1, 1]} : vector<12x16x16xf32> to vector<4x16x16xf32>
    "tpu.trace_start"() <{level = 10 : i32, message = "cik,ckj->cij"}> : () -> ()
    %cst_4 = arith.constant dense<0.000000e+00> : vector<4x16x16xf32>
    %8 = tpu.matmul %5, %6, %cst_4 {dimension_numbers = #tpu.dot_dimension_numbers<[2], [1], [1], [2], [0, 0, 0, 1, 1, 2], [0], [0]>} : vector<4x16x16xf32>, vector<4x16x16xf32>, vector<4x16x16xf32> -> vector<4x16x16xf32>
    "tpu.trace_stop"() : () -> ()
    %cst_5 = arith.constant dense<0xFF800000> : vector<16x16xf32>
    %9 = vector.multi_reduction <maximumf>, %8, %cst_5 [0] : vector<4x16x16xf32> to vector<16x16xf32>
    %10 = vector.shape_cast %9 : vector<16x16xf32> to vector<1x16x16xf32>
    %11 = vector.broadcast %10 : vector<1x16x16xf32> to vector<4x16x16xf32>
    %12 = arith.subf %8, %11 : vector<4x16x16xf32>
    %13 = math.exp %12 : vector<4x16x16xf32>
    %cst_6 = arith.constant dense<0.000000e+00> : vector<16x16xf32>
    %14 = vector.multi_reduction <add>, %13, %cst_6 [0] : vector<4x16x16xf32> to vector<16x16xf32>
    %15 = vector.shape_cast %14 : vector<16x16xf32> to vector<1x16x16xf32>
    %16 = tpu.reciprocal %15 {approx = true} : vector<1x16x16xf32> -> vector<1x16x16xf32>
    %17 = arith.mulf %15, %16 : vector<1x16x16xf32>
    %cst_7 = arith.constant 2.000000e+00 : f32
    %18 = vector.broadcast %cst_7 : f32 to vector<1x16x16xf32>
    %19 = arith.subf %18, %17 : vector<1x16x16xf32>
    %20 = arith.mulf %16, %19 : vector<1x16x16xf32>
    %21 = vector.broadcast %20 : vector<1x16x16xf32> to vector<4x16x16xf32>
    %22 = arith.mulf %13, %21 : vector<4x16x16xf32>
    "tpu.trace_start"() <{level = 10 : i32, message = "cik,ckj->cij"}> : () -> ()
    %cst_8 = arith.constant dense<0.000000e+00> : vector<4x16x16xf32>
    %23 = tpu.matmul %7, %22, %cst_8 {dimension_numbers = #tpu.dot_dimension_numbers<[2], [1], [1], [2], [0, 0, 0, 1, 1, 2], [0], [0]>} : vector<4x16x16xf32>, vector<4x16x16xf32>, vector<4x16x16xf32> -> vector<4x16x16xf32>
    "tpu.trace_stop"() : () -> ()
    %24 = vector.shape_cast %23 : vector<4x16x16xf32> to vector<4x256xf32>
    %25 = arith.addf %2, %24 : vector<4x256xf32>
    %c0_9 = arith.constant 0 : index
    %c0_10 = arith.constant 0 : index
    %c0_11 = arith.constant 0 : index
    %26 = vector.load %arg3[%c0_9, %c0_10, %c0_11] : memref<1x4x256xf32, #tpu.memory_space<vmem>>, vector<1x4x256xf32>
    %27 = vector.shape_cast %26 : vector<1x4x256xf32> to vector<4x256xf32>
    %28 = vector.shape_cast %25 : vector<4x256xf32> to vector<1x4x256xf32>
    tpu.vector_store %arg3[%c0_9, %c0_10, %c0_11], %28 {strides = array<i32>} : memref<1x4x256xf32, #tpu.memory_space<vmem>>, vector<1x4x256xf32>,
    return
  }
  func.func @transform_0(%arg0: i32) -> (i32, i32, i32) {
    %c0_i32 = arith.constant 0 : i32
    %c0_i32_0 = arith.constant 0 : i32
    %c0_i32_1 = arith.constant 0 : i32
    return %arg0, %c0_i32, %c0_i32_0 : i32, i32, i32
  }
  func.func @transform_1(%arg0: i32) -> (i32, i32) {
    %c0_i32 = arith.constant 0 : i32
    %c0_i32_0 = arith.constant 0 : i32
    %c0_i32_1 = arith.constant 0 : i32
    return %c0_i32, %c0_i32_0 : i32, i32
  }
  func.func @transform_2(%arg0: i32) -> (i32, i32, i32) {
    %c0_i32 = arith.constant 0 : i32
    %c0_i32_0 = arith.constant 0 : i32
    %c0_i32_1 = arith.constant 0 : i32
    return %arg0, %c0_i32, %c0_i32_0 : i32, i32, i32
  }
}

</mosaic_0001>

<bundles_post_ra>
// kernel: tpu_custom_call.1
= control target key start
LH: loop header
LB: loop body
LE: loop exit
PB: predicated region body
PF: predicated region fallthrough
CT: control target
= control target key end

     0   :  { %7 = vsyncpa [#allocation3], 0  ;;  %s2393_s0 = inlined_call_operand.vmem [shape: f32[2,4,256], index: 0, kind: input, shape index: {}]   ;;  %s2394_s1 = inlined_call_operand.vmem [shape: f32[12,4], index: 1, kind: input, shape index: {}]   ;;  %s2395_s2 = inlined_call_operand.hbm [shape: f32[2,4,256], index: 2, kind: output, shape index: {}]  }
   0x1   :  { %9 = vsyncpa [#allocation3 + $0x1], 0  ;;  %s2055_s9 = smov 0   ;;  %s2057_s10 = smov 0  }
   0x2   :  { %s2059_s11 = smov 0   ;;  %s2061_s12 = smov 0  }
   0x3 LB: > { %s2076_s13 = sadd.s32 4294967295, %s2027_s12   ;;  %s1741_s14 = sadd.s32 4294967294, %s2027_s12   ;;  %s2027_s12 = sphi %s2061_s12, %s2401_s12   ;;  %s2023_s11 = sphi %s2059_s11, %s2400_s11   ;;  %s2019_s10 = sphi %s2057_s10, %s2399_s10   ;;  %s2015_s9 = sphi %s2055_s9, %s2398_s9  }
   0x4   : > { %s2080_s15 = sadd.s32 1, %s2027_s12   ;;  %s69_s16 = sadd.s32 1, %s2023_s11 }
   0x5   : > { %s66_s17 = ssub.s32 %s2027_s12, %s2080_s15  ;;  %p79_p0 = scmp.ne.s32.totalorder %s2023_s11, %s2019_s10 }
   0x6   : > { %p67_p1 = scmp.eq.s32.totalorder %s66_s17, 0  ;;  %p80_p2 = scmp.eq.s32.totalorder %s2076_s13, 1 }
   0x7   : > { %p85_p3 = scmp.ne.s32.totalorder %s2019_s10, %s2015_s9  ;;  %p86_p4 = scmp.eq.s32.totalorder %s1741_s14, 1 }
   0x8   : > { %s2091_s18 = scalar_select %p67_p1, %s2023_s11, %s69_s16  }
   0x9   : > { %p2093_p5 = por %p80_p2, %p79_p0  ;;  %p2097_p6 = por %p86_p4, %p85_p3 }
   0xa   : > { %p1744_p7 = scmp.ge.s32.totalorder %s2027_s12, 1  ;;  %p115_p8 = scmp.lt.s32.totalorder %s2027_s12, 3 }
   0xc   : > { %p116_p9 = pnand %p1744_p7, %p115_p8 }
   0xd   : > { %p137_p10 = scmp.lt.s32.totalorder (!%p116_p9), %s2076_s13, 1  ;;  %v2029_v0 = vmov (!%p116_p9), 0.0   ;;  %vm154_vm0 = vcmask (!%p116_p9), 1043456   ;;  %v142_v3 = vld [vmem:[%s2394_s1] sm:$0xff] (!%p116_p9)  ;;  %vm147_vm1 = vcmask (!%p116_p9), 31744   ;;  %s2030_s30 = smov (!%p116_p9), 80   ;;  %v329_v13 = vlaneseq (!%p116_p9) }
   0xe   : > { %119 = sbr.rel (%p116_p9) target bundleno = 1058 (0x422), region = 28  ;;  %223 = vmatprep.mubr.f32.mxu0 (!%p116_p9), %v2029_v0  ;;  %v143_v4 = vld [vmem:[%s2394_s1 + $0x8] sm:$0xf] (!%p116_p9)  ;;  %s2031_s3 = smov (!%p116_p9), 112   ;;  %v2037_v11 = vmov (!%p116_p9), 1983009808  }
   0xf   : > { %s2032_s4 = smov (!%p116_p9), 64   ;;  %s2033_s5 = smov (!%p116_p9), 96   ;;  %v327_v12 = vunpack.c.l.s4 (!%p116_p9), %v2037_v11  ;;  %v330_v17 = vshrl.u32 (!%p116_p9), %v329_v13, 7  ;;  %v2038_v18 = vmov (!%p116_p9), 1934713408   ;;  %vm732_vm2 = vcmask (!%p116_p9), 130048  }
  0x10   : > { %s2034_s6 = smov (!%p116_p9), 32   ;;  %s2035_s7 = smov (!%p116_p9), 48   ;;  %v391_v19 = vunpack.c.l.s4 (!%p116_p9), %v2038_v18  ;;  %vm1642_vm3 = vcmask (!%p116_p9), 261120   ;;  %vm1644_vm4 = vcmask (!%p116_p9), 392192   ;;  %vm1646_vm5 = vcmask (!%p116_p9), 523264  }
  0x11   : > { %s2036_s8 = smov (!%p116_p9), 16   ;;  %v328_v16 = vunpack.c.0.s8 (!%p116_p9), %v327_v12  ;;  %s134_s14 = sand.u32 (!%p116_p9), 1, %s2019_s10   ;;  %vm1648_vm6 = vcmask (!%p116_p9), 654336   ;;  %vm1650_vm7 = vcmask (!%p116_p9), 785408   ;;  %vm1652_vm8 = vcmask (!%p116_p9), 916480  }
  0x12   : > { %v392_v25 = vunpack.c.0.s8 (!%p116_p9), %v391_v19  ;;  %s1745_s16 = sshll.u32 (!%p116_p9), %s134_s14, 3  ;;  %s1774_s17 = sshll.u32 (!%p116_p9), %s2076_s13, 7 }
  0x13   : > { %v2186_v23 = vsub.s32 (!%p116_p9), %v328_v16, %v330_v17  ;;  %s1668_s26 = scalar_lea.sflag (!%p116_p9), [#allocation3], %s134_s14 }
  0x14   : > { %v2190_v32 = vsub.s32 (!%p116_p9), %v392_v25, %v330_v17 }
  0x15   : > { %s138_s21 = scalar_select %p137_p10, %s2076_s13, 1 }
  0x16   : > { %s2039_s13 = smov [#allocation2]  }
  0x17   : > { %s1773_s22 = sshll.u32 %s138_s21, 3  ;;  %s136_s21 = scalar_lea.vmem [#allocation2], %s1745_s16 }
  0x18   : > { %s141_s25 = scalar_lea.vmem %s2393_s0, %s1773_s22  ;;  %s1682_s22 = sshll.u32 %s136_s21, 4  ;;  %s2353_s22 = int_to_ptr.vmem [resolvable:$true] %s1682_s22 }
  0x19   : > { %v2109_v1 = vld [vmem:[%s141_s25] sm:$0xff]  ;;  %s2351_s25 = scalar_lea.hbm %s2395_s2, %s1774_s17  ;;  %s1965_s27 = scalar_lea.vmem %s2353_s22, 128 }
  0x1a   : > { %v146_v2 = vcombine.high %v2109_v1, %v2109_v1  ;;  %p1966_p11 = scmp.ne.s32.totalorder %s2353_s22, %s1965_s27  ;;  %s1969_s28 = sshll.u32 %s2039_s13, 4  ;;  %s1970_s28 = int_to_ptr.vmem [resolvable:$false] %s1969_s28 }
  0x1b   : > { %s1971_s29 = scalar_lea.vmem %s1970_s28, 256  ;;  %p1972_p0 = scmp.lt.s32.totalorder %s2353_s22, %s1970_s28 }
  0x1c   : > { %1748 = vmatprep.subr.msk.mxu0 %vm154_vm0, %v146_v2  ;;  %p1967_p12 = pnand %p1966_p11, %p2093_p5  ;;  %p1973_p1 = scmp.lt.s32.totalorder %s1971_s29, %s1965_s27 }
  0x1d   : > { %1749 = vmatpush1.msk.msra.mxu0 %vm154_vm0, %v2109_v1 }
  0x1e   : > { %1750 = vmatmul.mubr.msk.f32.vlgmr.msra.gmra.mrb[0].mxu0 %vm147_vm1, %v142_v3  ;;  %p1968_p13 = pneg %p1967_p12  ;;  %p1974_p2 = por %p1973_p1, %p1972_p0 }
  0x1f   : > { %229 = vmatprep.mubr.f32.mxu0 %v2029_v0 }
  0x20   : > { %p1975_p3 = pnand %p1974_p2, %p1968_p13 }
  0x22   : > { %1751 = vmatmul.mubr.msk.f32.gmra.mrb[2].mxu0 %vm147_vm1, %v143_v4 }
  0xf1   : > { %v2121_v5 = vpop.f32.mrb[0].mxu0 }
  0xf2   : > { %250 = vrot.lane.b32.xlu1 %v2121_v5, %s2030_s30  ;;  %238 = vrot.lane.b32.xlu0 %v2121_v5, %s2031_s3  ;;  %v2127_v6 = vpop.f32.mrb[1].mxu0 }
  0xf5   : > { %v2141_v7 = vpop.f32.mrb[2].mxu0 }
  0xf6   : > { %256 = vrot.lane.b32.xlu1 %v2121_v5, %s2032_s4  ;;  %244 = vrot.lane.b32.xlu0 %v2121_v5, %s2033_s5  ;;  %v2155_v8 = vpop.f32.mrb[3].mxu0 }
  0xfa   : > { %268 = vrot.lane.b32.xlu1 %v2121_v5, %s2034_s6  ;;  %262 = vrot.lane.b32.xlu0 %v2121_v5, %s2035_s7 }
  0xfe   : > { %274 = vrot.lane.b32.xlu0 %v2121_v5, %s2036_s8  ;;  %282 = vrot.lane.b32.xlu1 %v2127_v6, %s2031_s3 }
 0x102   : > { %288 = vrot.lane.b32.xlu0 %v2127_v6, %s2033_s5  ;;  %294 = vrot.lane.b32.xlu1 %v2127_v6, %s2030_s30 }
 0x106   : > { %300 = vrot.lane.b32.xlu0 %v2127_v6, %s2032_s4  ;;  %306 = vrot.lane.b32.xlu1 %v2127_v6, %s2035_s7 }
 0x10a   : > { %312 = vrot.lane.b32.xlu0 %v2127_v6, %s2034_s6  ;;  %318 = vrot.lane.b32.xlu1 %v2127_v6, %s2036_s8 }
 0x10e   : > { %246 = vrot.lane.b32.xlu1 %v2141_v7, %s2033_s5  ;;  %240 = vrot.lane.b32.xlu0 %v2141_v7, %s2031_s3 }
 0x112   : > { %258 = vrot.lane.b32.xlu1 %v2141_v7, %s2032_s4  ;;  %252 = vrot.lane.b32.xlu0 %v2141_v7, %s2030_s30 }
 0x116   : > { %270 = vrot.lane.b32.xlu1 %v2141_v7, %s2034_s6  ;;  %264 = vrot.lane.b32.xlu0 %v2141_v7, %s2035_s7 }
 0x11a   : > { %276 = vrot.lane.b32.xlu0 %v2141_v7, %s2036_s8  ;;  %284 = vrot.lane.b32.xlu1 %v2155_v8, %s2031_s3 }
 0x11e   : > { %290 = vrot.lane.b32.xlu0 %v2155_v8, %s2033_s5  ;;  %296 = vrot.lane.b32.xlu1 %v2155_v8, %s2030_s30 }
 0x122   : > { %302 = vrot.lane.b32.xlu0 %v2155_v8, %s2032_s4  ;;  %308 = vrot.lane.b32.xlu1 %v2155_v8, %s2035_s7 }
 0x126   : > { %314 = vrot.lane.b32.xlu0 %v2155_v8, %s2034_s6  ;;  %320 = vrot.lane.b32.xlu1 %v2155_v8, %s2036_s8 }
 0x164   : > { %v251_v9 = vpop.permute.xlu1 %250  ;;  %v239_v10 = vpop.permute.xlu0 %238 }
 0x165   : > { %v340_v24 = vcombine.low %v239_v10, %v251_v9  ;;  %v341_v46 = vcombine.high %v239_v10, %v251_v9 }
 0x167   : > { %v348_v30 = vrot.slane %v340_v24, %v2186_v23  ;;  %v355_v59 = vrot.slane %v341_v46, %v2186_v23 }
 0x168   : > { %v257_v14 = vpop.permute.xlu1 %256  ;;  %v245_v15 = vpop.permute.xlu0 %244 }
 0x169   : > { %v324_v20 = vcombine.low %v2121_v5, %v245_v15  ;;  %v325_v39 = vcombine.high %v2121_v5, %v245_v15 }
 0x16b   : > { %v332_v26 = vrot.slane %v324_v20, %v2186_v23  ;;  %v339_v55 = vrot.slane %v325_v39, %v2186_v23 }
 0x16c   : > { %v269_v21 = vpop.permute.xlu1 %268  ;;  %v263_v22 = vpop.permute.xlu0 %262 }
 0x16d   : > { %v356_v27 = vcombine.low %v257_v14, %v269_v21  ;;  %v389_v33 = vcombine.high %v332_v26, %v348_v30  ;;  %v388_v41 = vcombine.low %v332_v26, %v348_v30  ;;  %v357_v42 = vcombine.high %v257_v14, %v269_v21 }
 0x16e   : > { %v404_v12 = vcombine.low %v339_v55, %v355_v59  ;;  %v405_v13 = vcombine.high %v339_v55, %v355_v59 }
 0x16f   : > { %v364_v34 = vrot.slane %v356_v27, %v2186_v23  ;;  %v2197_v47 = vrot.slane %v389_v33, %v2190_v32  ;;  %v2207_v53 = vrot.slane %v388_v41, %v2190_v32  ;;  %v371_v56 = vrot.slane %v357_v42, %v2186_v23 }
 0x170   : > { %v275_v28 = vpop.permute.xlu0 %274  ;;  %v283_v29 = vpop.permute.xlu1 %282 }
 0x171   : > { %v372_v31 = vcombine.low %v263_v22, %v275_v28  ;;  %v373_v36 = vcombine.high %v263_v22, %v275_v28  ;;  %v419_v28 = vrot.slane %v405_v13, %v2190_v32 }
 0x173   : > { %v380_v35 = vrot.slane %v372_v31, %v2186_v23  ;;  %v387_v49 = vrot.slane %v373_v36, %v2186_v23 }
 0x174   : > { %v289_v37 = vpop.permute.xlu0 %288  ;;  %v295_v38 = vpop.permute.xlu1 %294 }
 0x175   : > { %v421_v40 = vcombine.high %v364_v34, %v380_v35  ;;  %v461_v43 = vcombine.high %v2127_v6, %v289_v37  ;;  %v477_v44 = vcombine.high %v283_v29, %v295_v38  ;;  %v420_v45 = vcombine.low %v364_v34, %v380_v35 }
 0x176   : > { %v436_v61 = vcombine.low %v371_v56, %v387_v49  ;;  %v437_v62 = vcombine.high %v371_v56, %v387_v49  ;;  %v460_v63 = vcombine.low %v2127_v6, %v289_v37  ;;  %v476_v2 = vcombine.low %v283_v29, %v295_v38 }
 0x177   : > { %v2200_v48 = vrot.slane %v421_v40, %v2190_v32  ;;  %v2204_v52 = vrot.slane %v420_v45, %v2190_v32  ;;  %v475_v57 = vrot.slane %v461_v43, %v2186_v23  ;;  %v491_v58 = vrot.slane %v477_v44, %v2186_v23 }
 0x178   : > { %v301_v50 = vpop.permute.xlu0 %300  ;;  %v307_v51 = vpop.permute.xlu1 %306  ;;  %v451_v18 = vrot.slane %v437_v62, %v2190_v32  ;;  %v444_v20 = vrot.slane %v436_v61, %v2190_v32  ;;  %v468_v24 = vrot.slane %v460_v63, %v2186_v23  ;;  %v484_v25 = vrot.slane %v476_v2, %v2186_v23 }
 0x179   : > { %v454_v54 = vcombine.low %v2197_v47, %v2200_v48  ;;  %v452_v60 = vcombine.low %v2207_v53, %v2204_v52  ;;  %v540_v14 = vcombine.low %v475_v57, %v491_v58  ;;  %v541_v19 = vcombine.high %v475_v57, %v491_v58 }
 0x17a   : > { %v412_v29 = vrot.slane %v404_v12, %v2190_v32  ;;  %v458_v39 = vcombine.low %v419_v28, %v451_v18  ;;  %v524_v42 = vcombine.low %v468_v24, %v484_v25  ;;  %v525_v43 = vcombine.high %v468_v24, %v484_v25 }
 0x17b   : > { %1825 = vmatprep.mubr.msk.f32.mxu0 %vm732_vm2, %v454_v54  ;;  %1811 = vmatprep.mubr.msk.f32.mxu1 %vm732_vm2, %v452_v60  ;;  %v548_v30 = vrot.slane %v540_v14, %v2190_v32  ;;  %v555_v36 = vrot.slane %v541_v19, %v2190_v32  ;;  %v453_v12 = vcombine.high %v2207_v53, %v2204_v52 }
 0x17c   : > { %v313_v3 = vpop.permute.xlu0 %312  ;;  %v319_v4 = vpop.permute.xlu1 %318  ;;  %v456_v38 = vcombine.low %v412_v29, %v444_v20  ;;  %v457_v45 = vcombine.high %v412_v29, %v444_v20  ;;  %v532_v63 = vrot.slane %v524_v42, %v2190_v32 }
 0x17d   : > { %v492_v5 = vcombine.low %v301_v50, %v313_v3  ;;  %v493_v9 = vcombine.high %v301_v50, %v313_v3  ;;  %v508_v10 = vcombine.low %v307_v51, %v319_v4  ;;  %v509_v11 = vcombine.high %v307_v51, %v319_v4 }
 0x17e   : > { %v459_v50 = vcombine.high %v419_v28, %v451_v18  ;;  %v539_v4 = vrot.slane %v525_v43, %v2190_v32 }
 0x17f   : > { %v500_v15 = vrot.slane %v492_v5, %v2186_v23  ;;  %v507_v16 = vrot.slane %v493_v9, %v2186_v23  ;;  %v516_v17 = vrot.slane %v508_v10, %v2186_v23  ;;  %v523_v6 = vrot.slane %v509_v11, %v2186_v23 }
 0x180   : > { %v247_v21 = vpop.permute.xlu1 %246  ;;  %v241_v22 = vpop.permute.xlu0 %240 }
 0x181   : > { %v572_v26 = vcombine.low %v507_v16, %v523_v6  ;;  %v573_v27 = vcombine.high %v507_v16, %v523_v6  ;;  %v556_v31 = vcombine.low %v500_v15, %v516_v17  ;;  %v596_v35 = vcombine.low %v2141_v7, %v247_v21 }
 0x182   : > { %v557_v37 = vcombine.high %v500_v15, %v516_v17  ;;  %v455_v6 = vcombine.high %v2197_v47, %v2200_v48 }
 0x183   : > { %v587_v33 = vrot.slane %v573_v27, %v2190_v32  ;;  %v580_v34 = vrot.slane %v572_v26, %v2190_v32  ;;  %v564_v54 = vrot.slane %v556_v31, %v2190_v32  ;;  %v603_v7 = vrot.slane %v596_v35, %v2186_v23 }
 0x184   : > { %v259_v40 = vpop.permute.xlu1 %258  ;;  %v253_v41 = vpop.permute.xlu0 %252  ;;  %v571_v57 = vrot.slane %v557_v37, %v2190_v32 }
 0x185   : > { %v592_v44 = vcombine.low %v548_v30, %v580_v34  ;;  %v594_v46 = vcombine.low %v555_v36, %v587_v33  ;;  %v593_v49 = vcombine.high %v548_v30, %v580_v34  ;;  %v595_v51 = vcombine.high %v555_v36, %v587_v33 }
 0x186   : > { %v604_v56 = vcombine.low %v241_v22, %v253_v41  ;;  %v588_v5 = vcombine.low %v532_v63, %v564_v54  ;;  %v590_v10 = vcombine.low %v539_v4, %v571_v57  ;;  %v589_v16 = vcombine.high %v532_v63, %v564_v54 }
 0x187   : > { %v1863_v55 = vpack.c.bf16 %v592_v44, %v456_v38  ;;  %v1871_v58 = vpack.c.bf16 %v594_v46, %v458_v39  ;;  %v1867_v59 = vpack.c.bf16 %v593_v49, %v457_v45  ;;  %v1875_v60 = vpack.c.bf16 %v595_v51, %v459_v50 }
 0x188   : > { %v271_v61 = vpop.permute.xlu1 %270  ;;  %v265_v62 = vpop.permute.xlu0 %264  ;;  %v611_v2 = vrot.slane %v604_v56, %v2186_v23  ;;  %v591_v19 = vcombine.high %v539_v4, %v571_v57 }
 0x189   : > { %1864 = vmatprep.subr.bf16.mxu1 %v1863_v55  ;;  %v612_v3 = vcombine.low %v259_v40, %v271_v61  ;;  %1872 = vmatprep.subr.bf16.mxu0 %v1871_v58 }
 0x18a   : > { %1866 = vmatpush3.bf16.msra.mxu1 %v1863_v55  ;;  %1874 = vmatpush3.bf16.msra.mxu0 %v1871_v58  ;;  %v629_v9 = vcombine.high %v603_v7, %v611_v2  ;;  %v628_v13 = vcombine.low %v603_v7, %v611_v2 }
 0x18b   : > { %1868 = vmatprep.subr.bf16.mxu1 %v1867_v59  ;;  %v619_v14 = vrot.slane %v612_v3, %v2186_v23 }
 0x18c   : > { %v277_v11 = vpop.permute.xlu0 %276  ;;  %v636_v52 = vrot.slane %v628_v13, %v2190_v32  ;;  %v2255_v20 = vrot.slane %v629_v9, %v2190_v32  ;;  %v285_v9 = vpop.permute.xlu1 %284 }
 0x18d   : > { %1812 = vmatmul.mubr.msk.f32.vlgmr.msra.gmra.mrb[0].mxu1 %vm732_vm2, %v588_v5  ;;  %v620_v15 = vcombine.low %v265_v62, %v277_v11  ;;  %1826 = vmatmul.mubr.msk.f32.vlgmr.msra.gmra.mrb[4].mxu0 %vm732_vm2, %v590_v10 }
 0x18e   : > { %1870 = vmatpush3.bf16.msra.mxu1 %v1867_v59  ;;  %1818 = vmatprep.mubr.msk.f32.mxu1 %vm732_vm2, %v453_v12 }
 0x18f   : > { %1876 = vmatprep.subr.bf16.mxu1 %v1875_v60  ;;  %v627_v17 = vrot.slane %v620_v15, %v2186_v23 }
 0x191   : > { %1819 = vmatmul.mubr.msk.f32.vlgmr.msra.gmra.mrb[2].mxu1 %vm732_vm2, %v589_v16  ;;  %v644_v53 = vcombine.low %v619_v14, %v627_v17  ;;  %v645_v18 = vcombine.high %v619_v14, %v627_v17 }
 0x192   : > { %1878 = vmatpush3.bf16.msra.mxu1 %v1875_v60  ;;  %1832 = vmatprep.mubr.msk.f32.mxu1 %vm732_vm2, %v455_v6  ;;  %v291_v6 = vpop.permute.xlu0 %290 }
 0x193   : > { %v652_v21 = vrot.slane %v644_v53, %v2190_v32  ;;  %v2259_v22 = vrot.slane %v645_v18, %v2190_v32 }
 0x195   : > { %1833 = vmatmul.mubr.msk.f32.vlgmr.msra.gmra.mrb[4].mxu1 %vm732_vm2, %v591_v19  ;;  %v660_v47 = vcombine.low %v636_v52, %v652_v21  ;;  %v661_v48 = vcombine.high %v636_v52, %v652_v21  ;;  %v662_v24 = vcombine.low %v2255_v20, %v2259_v22  ;;  %v663_v25 = vcombine.high %v2255_v20, %v2259_v22  ;;  %v297_v52 = vpop.permute.xlu1 %296 }
 0x197   : > { %1839 = vmatprep.mubr.msk.f32.mxu0 %vm732_vm2, %v660_v47  ;;  %1846 = vmatprep.mubr.msk.f32.mxu1 %vm732_vm2, %v661_v48 }
 0x260   : > { %v1813_v26 = vpop.f32.mrb[0].mxu1  ;;  %v1827_v28 = vpop.f32.mrb[4].mxu0 }
 0x261   : > { %v1064_v27 = vsel %vm732_vm2, %v1813_v26, -inf  ;;  %v805_v29 = vpop.f32.mrb[1].mxu1  ;;  %v1066_v30 = vsel %vm732_vm2, %v1827_v28, -inf  ;;  %v967_v33 = vpop.f32.mrb[5].mxu0 }
 0x262   : > { %v1057_v31 = vsel %vm732_vm2, %v805_v29, -inf  ;;  %v1067_v34 = vmax.f32 %v1064_v27, %v1066_v30  ;;  %v1059_v35 = vsel %vm732_vm2, %v967_v33, -inf }
 0x263   : > { %v1060_v36 = vmax.f32 %v1057_v31, %v1059_v35 }
 0x264   : > { %v1820_v37 = vpop.f32.mrb[2].mxu1 }
 0x265   : > { %v886_v38 = vpop.f32.mrb[3].mxu1  ;;  %v1065_v40 = vsel %vm732_vm2, %v1820_v37, -inf }
 0x266   : > { %v1058_v43 = vsel %vm732_vm2, %v886_v38, -inf }
 0x268   : > { %v1834_v39 = vpop.f32.mrb[4].mxu1 }
 0x269   : > { %v1068_v41 = vsel %vm732_vm2, %v1834_v39, -inf  ;;  %v1048_v42 = vpop.f32.mrb[5].mxu1 }
 0x26a   : > { %v1069_v44 = vmax.f32 %v1065_v40, %v1068_v41  ;;  %v1061_v45 = vsel %vm732_vm2, %v1048_v42, -inf  ;;  %v664_v40 = vcombine.low %v2155_v8, %v291_v6  ;;  %v672_v41 = vcombine.low %v285_v9, %v297_v52 }
 0x26b   : > { %v1062_v46 = vmax.f32 %v1058_v43, %v1061_v45 }
 0x26c   : > { %v1070_v49 = vmax.f32 %v1067_v34, %v1069_v44  ;;  %v309_v34 = vpop.permute.xlu1 %308 }
 0x26d   : > { %v1063_v50 = vmax.f32 %v1060_v36, %v1062_v46 }
 0x26e   : > { %v1072_v51 = vsub.f32 %v1813_v26, %v1070_v49  ;;  %v1074_v54 = vsub.f32 %v1820_v37, %v1070_v49  ;;  %v1076_v55 = vsub.f32 %v1827_v28, %v1070_v49  ;;  %v1078_v7 = vsub.f32 %v1834_v39, %v1070_v49 }
 0x26f   : > { %v1071_v56 = vsub.f32 %v805_v29, %v1063_v50  ;;  %v1073_v57 = vsub.f32 %v886_v38, %v1063_v50  ;;  %v1075_v58 = vsub.f32 %v967_v33, %v1063_v50  ;;  %v1077_v59 = vsub.f32 %v1048_v42, %v1063_v50  ;;  %v303_v33 = vpop.permute.xlu0 %302 }
 0x270   : > { %v1081_v60 = vmul.f32 1.442695, %v1072_v51  ;;  %v1085_v61 = vmul.f32 1.442695, %v1074_v54  ;;  %v1089_v62 = vmul.f32 1.442695, %v1076_v55  ;;  %v321_v38 = vpop.permute.xlu1 %320  ;;  %v671_v49 = vrot.slane %v664_v40, %v2186_v23 }
 0x271   : > { %v1093_v63 = vmul.f32 1.442695, %v1078_v7  ;;  %v1079_v2 = vmul.f32 1.442695, %v1071_v56  ;;  %v1083_v3 = vmul.f32 1.442695, %v1073_v57  ;;  %v688_v43 = vcombine.low %v309_v34, %v321_v38 }
 0x272   : > { %1945 = vpow2.f32 %v1081_v60  ;;  %v1087_v4 = vmul.f32 1.442695, %v1075_v58  ;;  %v1091_v5 = vmul.f32 1.442695, %v1077_v59  ;;  %v679_v50 = vrot.slane %v672_v41, %v2186_v23 }
 0x273   : > { %1947 = vpow2.f32 %v1085_v61  ;;  %v315_v37 = vpop.permute.xlu0 %314  ;;  %v695_v54 = vrot.slane %v688_v43, %v2186_v23 }
 0x274   : > { %1949 = vpow2.f32 %v1089_v62  ;;  %v680_v42 = vcombine.low %v303_v33, %v315_v37  ;;  %v696_v59 = vcombine.low %v671_v49, %v679_v50 }
 0x275   : > { %1951 = vpow2.f32 %v1093_v63 }
 0x276   : > { %1953 = vpow2.f32 %v1079_v2  ;;  %v687_v51 = vrot.slane %v680_v42, %v2186_v23  ;;  %v704_v9 = vrot.slane %v696_v59, %v2190_v32 }
 0x277   : > { %1955 = vpow2.f32 %v1083_v3 }
 0x278   : > { %1957 = vpow2.f32 %v1087_v4  ;;  %v712_v60 = vcombine.low %v687_v51, %v695_v54 }
 0x279   : > { %1959 = vpow2.f32 %v1091_v5  ;;  %v697_v5 = vcombine.high %v671_v49, %v679_v50 }
 0x27c   : > { %v1946_v10 = vpop.eup %1945 }
 0x27d   : > { %v1948_v11 = vpop.eup %1947  ;;  %v1102_v12 = vsel %vm732_vm2, %v1946_v10, 0.0 }
 0x27e   : > { %v1950_v13 = vpop.eup %1949  ;;  %v1103_v14 = vsel %vm732_vm2, %v1948_v11, 0.0 }
 0x27f   : > { %v1952_v15 = vpop.eup %1951  ;;  %v1104_v16 = vadd.f32 %v1103_v14, %v1102_v12  ;;  %v1105_v53 = vsel %vm732_vm2, %v1950_v13, 0.0  ;;  %v713_v12 = vcombine.high %v687_v51, %v695_v54  ;;  %v720_v14 = vrot.slane %v712_v60, %v2190_v32 }
 0x280   : > { %v1954_v17 = vpop.eup %1953  ;;  %v1107_v48 = vsel %vm732_vm2, %v1952_v15, 0.0 }
 0x281   : > { %v1956_v18 = vpop.eup %1955  ;;  %v1106_v19 = vadd.f32 %v1105_v53, %v1104_v16  ;;  %v1095_v21 = vsel %vm732_vm2, %v1954_v17, 0.0 }
 0x282   : > { %v1958_v47 = vpop.eup %1957  ;;  %v1096_v26 = vsel %vm732_vm2, %v1956_v18, 0.0 }
 0x283   : > { %v1960_v27 = vpop.eup %1959  ;;  %v1108_v28 = vadd.f32 %v1107_v48, %v1106_v19  ;;  %v1097_v29 = vadd.f32 %v1096_v26, %v1095_v21  ;;  %v1098_v30 = vsel %vm732_vm2, %v1958_v47, 0.0 }
 0x284   : > { %v1100_v35 = vsel %vm732_vm2, %v1960_v27, 0.0 }
 0x285   : > { %1961 = vrcp.f32 %v1108_v28  ;;  %v1099_v31 = vadd.f32 %v1098_v30, %v1097_v29 }
 0x287   : > { %v1101_v36 = vadd.f32 %v1100_v35, %v1099_v31 }
 0x289   : > { %1963 = vrcp.f32 %v1101_v36 }
 0x28f   : > { %v1962_v39 = vpop.eup %1961 }
 0x290   : > { %v1112_v44 = vmul.f32 %v1962_v39, %v1108_v28 }
 0x292   : > { %v1114_v45 = vsub.f32 2.0, %v1112_v44 }
 0x293   : > { %v1964_v46 = vpop.eup %1963 }
 0x294   : > { %v1111_v55 = vmul.f32 %v1964_v46, %v1101_v36  ;;  %v1116_v7 = vmul.f32 %v1962_v39, %v1114_v45 }
 0x296   : > { %v1113_v56 = vsub.f32 2.0, %v1111_v55  ;;  %v1118_v57 = vmul.f32 %v1946_v10, %v1116_v7  ;;  %v1120_v58 = vmul.f32 %v1948_v11, %v1116_v7  ;;  %v1122_v8 = vmul.f32 %v1950_v13, %v1116_v7 }
 0x297   : > { %v1124_v61 = vmul.f32 %v1952_v15, %v1116_v7  ;;  %v711_v11 = vrot.slane %v697_v5, %v2190_v32  ;;  %v727_v13 = vrot.slane %v713_v12, %v2190_v32  ;;  %v728_v15 = vcombine.low %v704_v9, %v720_v14 }
 0x298   : > { %v1115_v62 = vmul.f32 %v1964_v46, %v1113_v56 }
 0x299   : > { %v730_v53 = vcombine.low %v711_v11, %v727_v13 }
 0x29a   : > { %v1117_v63 = vmul.f32 %v1954_v17, %v1115_v62  ;;  %v1119_v2 = vmul.f32 %v1956_v18, %v1115_v62  ;;  %v1121_v3 = vmul.f32 %v1958_v47, %v1115_v62  ;;  %v1123_v4 = vmul.f32 %v1960_v27, %v1115_v62 }
 0x29b   : > { %v729_v17 = vcombine.high %v704_v9, %v720_v14  ;;  %v731_v18 = vcombine.high %v711_v11, %v727_v13 }
 0x29c   : > { %v1879_v16 = vpack.c.bf16 %v1118_v57, %v1117_v63  ;;  %v1883_v6 = vpack.c.bf16 %v1120_v58, %v1119_v2  ;;  %v1887_v52 = vpack.c.bf16 %v1122_v8, %v1121_v3  ;;  %v1891_v10 = vpack.c.bf16 %v1124_v61, %v1123_v4 }
 0x29e   : > { %1880 = vmatprep.subr.bf16.mxu0 %v1879_v16  ;;  %1884 = vmatprep.subr.bf16.mxu1 %v1883_v6 }
 0x29f   : > { %1882 = vmatpush3.bf16.msra.mxu0 %v1879_v16  ;;  %1886 = vmatpush3.bf16.msra.mxu1 %v1883_v6 }
 0x2a0   : > { %1888 = vmatprep.subr.bf16.mxu0 %v1887_v52  ;;  %1892 = vmatprep.subr.bf16.mxu1 %v1891_v10 }
 0x2a2   : > { %1840 = vmatmul.mubr.msk.f32.vlgmr.msra.gmra.mrb[6].mxu0 %vm732_vm2, %v728_v15  ;;  %1847 = vmatmul.mubr.msk.f32.vlgmr.msra.gmra.mrb[6].mxu1 %vm732_vm2, %v729_v17 }
 0x2a3   : > { %1890 = vmatpush3.bf16.msra.mxu0 %v1887_v52  ;;  %1853 = vmatprep.mubr.msk.f32.mxu0 %vm732_vm2, %v662_v24 }
 0x2a4   : > { %1894 = vmatpush3.bf16.msra.mxu1 %v1891_v10  ;;  %1860 = vmatprep.mubr.msk.f32.mxu1 %vm732_vm2, %v663_v25 }
 0x2a6   : > { %1854 = vmatmul.mubr.msk.f32.vlgmr.msra.gmra.mrb[8].mxu0 %vm732_vm2, %v730_v53 }
 0x2a7   : > { %1861 = vmatmul.mubr.msk.f32.vlgmr.msra.gmra.mrb[8].mxu1 %vm732_vm2, %v731_v18 }
 0x375   : > { %v1841_v19 = vpop.f32.mrb[6].mxu0  ;;  %v1848_v21 = vpop.f32.mrb[6].mxu1 }
 0x376   : > { %v1197_v47 = vpop.f32.mrb[7].mxu0  ;;  %v1278_v48 = vpop.f32.mrb[7].mxu1 }
 0x379   : > { %v1855_v26 = vpop.f32.mrb[8].mxu0 }
 0x37a   : > { %v1517_v27 = vcombine.low %v1841_v19, %v1855_v26  ;;  %v1518_v28 = vcombine.high %v1841_v19, %v1855_v26  ;;  %v1862_v24 = vpop.f32.mrb[8].mxu1  ;;  %v1359_v29 = vpop.f32.mrb[9].mxu0 }
 0x37b   : > { %v1533_v30 = vcombine.low %v1848_v21, %v1862_v24  ;;  %v1534_v31 = vcombine.high %v1848_v21, %v1862_v24  ;;  %v1449_v33 = vcombine.low %v1197_v47, %v1359_v29  ;;  %v1450_v20 = vcombine.high %v1197_v47, %v1359_v29  ;;  %v1440_v22 = vpop.f32.mrb[9].mxu1 }
 0x37c   : > { %v1525_v25 = vrot.slane %v1517_v27, %v2186_v23  ;;  %v1532_v34 = vrot.slane %v1518_v28, %v2186_v23  ;;  %v1465_v35 = vcombine.low %v1278_v48, %v1440_v22  ;;  %v1466_v36 = vcombine.high %v1278_v48, %v1440_v22 }
 0x37d   : > { %v1541_v37 = vrot.slane %v1533_v30, %v2186_v23  ;;  %v1548_v38 = vrot.slane %v1534_v31, %v2186_v23  ;;  %v1457_v39 = vrot.slane %v1449_v33, %v2186_v23  ;;  %v1464_v40 = vrot.slane %v1450_v20, %v2186_v23 }
 0x37e   : > { %v1473_v41 = vrot.slane %v1465_v35, %v2186_v23  ;;  %v1480_v42 = vrot.slane %v1466_v36, %v2186_v23 }
 0x37f   : > { %v1549_v43 = vcombine.low %v1525_v25, %v1541_v37  ;;  %v1550_v44 = vcombine.high %v1525_v25, %v1541_v37  ;;  %v1565_v45 = vcombine.low %v1532_v34, %v1548_v38  ;;  %v1566_v46 = vcombine.high %v1532_v34, %v1548_v38 }
 0x380   : > { %v1481_v49 = vcombine.low %v1457_v39, %v1473_v41  ;;  %v1482_v50 = vcombine.high %v1457_v39, %v1473_v41  ;;  %v1497_v51 = vcombine.low %v1464_v40, %v1480_v42  ;;  %v1498_v54 = vcombine.high %v1464_v40, %v1480_v42 }
 0x381   : > { %v1564_v55 = vrot.slane %v1550_v44, %v2190_v32  ;;  %v1573_v56 = vrot.slane %v1565_v45, %v2190_v32  ;;  %v1580_v57 = vrot.slane %v1566_v46, %v2190_v32  ;;  %v1557_v58 = vrot.slane %v1549_v43, %v2190_v32 }
 0x382   : > { %v1496_v7 = vrot.slane %v1482_v50, %v2190_v32  ;;  %v1505_v23 = vrot.slane %v1497_v51, %v2190_v32  ;;  %v1512_v8 = vrot.slane %v1498_v54, %v2190_v32  ;;  %v1489_v59 = vrot.slane %v1481_v49, %v2190_v32 }
 0x383   : > { %1618 = vrot.lane.b32.xlu1 %v1564_v55, %s2034_s6  ;;  %v1581_v60 = vcombine.high %v1557_v58, %v2029_v0  ;;  %v1582_v62 = vcombine.high %v1564_v55, %v2029_v0  ;;  %v1583_v32 = vcombine.high %v1573_v56, %v2029_v0  ;;  %v1584_v3 = vcombine.high %v1580_v57, %v2029_v0 }
 0x384   : > { %1590 = vrot.lane.b32.xlu0 %v1496_v7, %s2034_s6  ;;  %v1513_v61 = vcombine.high %v1489_v59, %v2029_v0  ;;  %v1514_v63 = vcombine.high %v1496_v7, %v2029_v0  ;;  %v1515_v2 = vcombine.high %v1505_v23, %v2029_v0  ;;  %v1516_v4 = vcombine.high %v1512_v8, %v2029_v0 }
 0x387   : > { %1626 = vrot.lane.b32.xlu1 %v1573_v56, %s2032_s4 }
 0x388   : > { %1598 = vrot.lane.b32.xlu0 %v1505_v23, %s2032_s4 }
 0x38b   : > { %1634 = vrot.lane.b32.xlu1 %v1580_v57, %s2033_s5 }
 0x38c   : > { %1606 = vrot.lane.b32.xlu0 %v1512_v8, %s2033_s5 }
 0x38f   : > { %1614 = vrot.lane.b32.xlu1 %v1581_v60, %s2036_s8 }
 0x390   : > { %1586 = vrot.lane.b32.xlu0 %v1513_v61, %s2036_s8 }
 0x393   : > { %1622 = vrot.lane.b32.xlu1 %v1582_v62, %s2035_s7 }
 0x394   : > { %1594 = vrot.lane.b32.xlu0 %v1514_v63, %s2035_s7 }
 0x397   : > { %1630 = vrot.lane.b32.xlu1 %v1583_v32, %s2030_s30 }
 0x398   : > { %1602 = vrot.lane.b32.xlu0 %v1515_v2, %s2030_s30 }
 0x39b   : > { %1638 = vrot.lane.b32.xlu1 %v1584_v3, %s2031_s3 }
 0x39c   : > { %1610 = vrot.lane.b32.xlu0 %v1516_v4, %s2031_s3 }
 0x3f5   : > { %v1619_v5 = vpop.permute.xlu1 %1618 }
 0x3f6   : > { %v1591_v9 = vpop.permute.xlu0 %1590 }
 0x3f9   : > { %v1627_v12 = vpop.permute.xlu1 %1626 }
 0x3fa   : > { %v1599_v14 = vpop.permute.xlu0 %1598 }
 0x3fd   : > { %v1635_v16 = vpop.permute.xlu1 %1634 }
 0x3fe   : > { %v1607_v6 = vpop.permute.xlu0 %1606 }
 0x401   : > { %v1615_v52 = vpop.permute.xlu1 %1614 }
 0x402   : > { %v1654_v10 = vsel %vm732_vm2, %v1557_v58, %v1615_v52  ;;  %v1587_v11 = vpop.permute.xlu0 %1586 }
 0x403   : > { %v1641_v13 = vsel %vm732_vm2, %v1489_v59, %v1587_v11  ;;  %v1655_v0 = vsel %vm1642_vm3, %v1654_v10, %v1619_v5 }
 0x404   : > { %v1643_v53 = vsel %vm1642_vm3, %v1641_v13, %v1591_v9 }
 0x405   : > { %v1623_v15 = vpop.permute.xlu1 %1622 }
 0x406   : > { %v1656_v17 = vsel %vm1644_vm4, %v1655_v0, %v1623_v15  ;;  %v1595_v18 = vpop.permute.xlu0 %1594 }
 0x407   : > { %v1645_v19 = vsel %vm1644_vm4, %v1643_v53, %v1595_v18  ;;  %v1657_v21 = vsel %vm1646_vm5, %v1656_v17, %v1627_v12 }
 0x408   : > { %v1647_v26 = vsel %vm1646_vm5, %v1645_v19, %v1599_v14 }
 0x409   : > { %v1631_v47 = vpop.permute.xlu1 %1630 }
 0x40a   : > { %v1658_v48 = vsel %vm1648_vm6, %v1657_v21, %v1631_v47  ;;  %v1603_v27 = vpop.permute.xlu0 %1602 }
 0x40b   : > { %v1649_v28 = vsel %vm1648_vm6, %v1647_v26, %v1603_v27  ;;  %v1659_v24 = vsel %vm1650_vm7, %v1658_v48, %v1635_v16 }
 0x40c   : > { %v1651_v31 = vsel %vm1650_vm7, %v1649_v28, %v1607_v6 }
 0x40d   : > { %v1639_v29 = vpop.permute.xlu1 %1638 }
 0x40e   : > { %v1660_v30 = vsel %vm1652_vm8, %v1659_v24, %v1639_v29  ;;  %v1611_v33 = vpop.permute.xlu0 %1610 }
 0x40f   : > { %v1653_v20 = vsel %vm1652_vm8, %v1651_v31, %v1611_v33 }
 0x410   : > { %v1663_v22 = vcombine.low %v1653_v20, %v1660_v30 }
 0x412   : > { %v1665_v25 = vadd.f32 %v1663_v22, %v2109_v1 }
 0x414   : > { %1666 = vst [vmem:[%s136_s21] sm:$0xff] %v1665_v25 }
 0x415   : > { %1978 = shalt.err (!%p1975_p3)
}
 0x416   : > { %s1979_s30 = scalar_lea.hbm %s2351_s25, 128  ;;  %s1983_s5 = scalar_lea.hbm %s2395_s2, 256 }
 0x417   : > { %p1980_p4 = scmp.ne.s32.totalorder %s2351_s25, %s1979_s30  ;;  %p1984_p9 = scmp.lt.u32.totalorder %s2351_s25, %s2395_s2 }
 0x418   : > { %p1985_p10 = scmp.lt.u32.totalorder %s1983_s5, %s1979_s30  ;;  %p1987_p12 = scmp.lt.u32.totalorder %s1979_s30, %s2351_s25 }
 0x419   : > { %p1981_p7 = pnand %p1980_p4, %p2093_p5 }
 0x41a   : > { %p1986_p11 = por %p1985_p10, %p1984_p9 }
 0x41b   : > { %p1982_p8 = pneg %p1981_p7 }
 0x41c   : > { %p1988_p13 = por %p1987_p12, %p1986_p11 }
 0x41e   : > { %p1989_p0 = pnand %p1988_p13, %p1982_p8 }
 0x420   : > { %1992 = shalt.err (!%p1989_p0)
}
 0x421   : > { %1895 = dma.vmem_to_hbm [thread:$0]  (%p2093_p5), %s2353_s22, 128, %s2351_s25, %s1668_s26  }
 0x422 PF: > { %p1901_p1 = scmp.ge.s32.totalorder %s2027_s12, 2  ;;  %s1694_s8 = sand.u32 1, %s2015_s9  }
 0x423   : > { %s1695_s14 = scalar_lea.sflag [#allocation3], %s1694_s8 }
 0x424   : > { %p1898_p2 = pnand %p1901_p1, %p2097_p6 }
 0x426   : > { %2010 = dma.done.wait (!%p1898_p2), %s1695_s14, 128  }
 0x427   : > { %2012 = vsyncadd (!%p1898_p2), %s1695_s14, 4294967168  ;;  %p12_p3 = scmp.ge.s32.totalorder %s2080_s15, 4   ;;  %s2398_s9 = smov %s2019_s10 }
 0x428   : > { %s2399_s10 = smov %s2023_s11  ;;  %s2400_s11 = smov %s2091_s18 }
 0x429   : > { %s2401_s12 = smov %s2080_s15  ;;  %14 = sbr.rel (!%p12_p3) target bundleno = 3 (0x3), region = 63 }
 0x430   :  { %1700 = vsyncpa [#allocation3], 1 }
 0x431   :  { %1702 = vsyncpa [#allocation3 + $0x1], 1 }

</bundles_post_ra>
